<compile_context>
chip_gen: v7x
topology: tpu7x:2x2x1
jax: 0.10.0
libtpu: 0.0.40
codegen_flags: <defaults>
</compile_context>

<pallas_src>
import functools

import jax
import jax.numpy as jnp
from jax.experimental import pallas as pl
from jax.experimental.pallas import tpu as pltpu

HIDDEN_PAD = 128   # hidden dim padded to a full lane width
OUT_PAD = 128      # fused head output padded to a full lane width


def _round_up(x, m):
    return ((x + m - 1) // m) * m


def ppo_fused_kernel(x_ref, w1_ref, b1_ref, wh_ref, bh_ref, out_ref, *, action_s):
    # layer1 + ReLU (MXU, f32 accumulation); hidden is 128-lane dense.
    x = x_ref[...]
    h = jnp.dot(x, w1_ref[...], preferred_element_type=jnp.float32) + b1_ref[...]
    h = jnp.maximum(h, 0.0)

    # Fused actor+critic head: one (TB,128)x(128,128) matmul.
    #   lanes [0, action_s)        -> actor logits
    #   lane  action_s             -> critic value
    #   lanes (action_s, 128)      -> zero padding
    head = jnp.dot(h, wh_ref[...], preferred_element_type=jnp.float32) + bh_ref[...]

    lane = jax.lax.broadcasted_iota(jnp.int32, head.shape, 1)
    is_actor = lane < action_s

    # Numerically-stable softmax restricted to the actor lanes (padded lanes -> -1e30,
    # so exp underflows to exactly 0 and does not perturb the normalization).
    logits = jnp.where(is_actor, head, jnp.float32(-1e30))
    m = jnp.max(logits, axis=-1, keepdims=True)
    e = jnp.exp(logits - m)
    denom = jnp.sum(e, axis=-1, keepdims=True)
    probs = e * pl.reciprocal(denom, approx=False)

    # Lane-dense output slab: probs in actor lanes, raw head (value / zeros) elsewhere.
    out_ref[...] = jnp.where(is_actor, probs, head).astype(out_ref.dtype)


def _prepare_fused_params(params):
    """Pad hidden->128 and fuse the actor/critic heads into one (128, 128) weight."""
    state_s, hidden = params["w1"].shape
    action_s = params["wa"].shape[1]

    w1 = jnp.zeros((state_s, HIDDEN_PAD), jnp.float32).at[:, :hidden].set(params["w1"])
    b1 = jnp.zeros((1, HIDDEN_PAD), jnp.float32).at[:, :hidden].set(params["b1"])

    wh = jnp.zeros((HIDDEN_PAD, OUT_PAD), jnp.float32)
    wh = wh.at[:hidden, :action_s].set(params["wa"])
    wh = wh.at[:hidden, action_s:action_s + 1].set(params["wc"])

    bh = jnp.zeros((1, OUT_PAD), jnp.float32)
    bh = bh.at[:, :action_s].set(params["ba"])
    bh = bh.at[:, action_s:action_s + 1].set(params["bc"])
    return w1, b1, wh, bh, action_s


def ppo_forward(x, params, *, max_batch_tile=512):
    """x: (B, state_s) float32. Returns (probs (B, action_s), value (B, 1))."""
    B, state_s = x.shape
    w1, b1, wh, bh, action_s = _prepare_fused_params(params)

    # Batch tile: multiple of 8 sublanes, capped so double-buffered blocks stay small.
    tb = min(max_batch_tile, _round_up(B, 8))
    bp = _round_up(B, tb)
    if bp != B:
        x = jnp.pad(x, ((0, bp - B), (0, 0)))
    grid = (bp // tb,)

    flops = 2 * bp * (state_s * HIDDEN_PAD + HIDDEN_PAD * OUT_PAD)
    bytes_accessed = 4 * (bp * state_s + bp * OUT_PAD
                          + state_s * HIDDEN_PAD + HIDDEN_PAD
                          + HIDDEN_PAD * OUT_PAD + OUT_PAD)

    out = pl.pallas_call(
        functools.partial(ppo_fused_kernel, action_s=action_s),
        out_shape=jax.ShapeDtypeStruct((bp, OUT_PAD), jnp.float32),
        grid_spec=pltpu.PrefetchScalarGridSpec(
            num_scalar_prefetch=0,
            grid=grid,
            in_specs=[
                pl.BlockSpec((tb, state_s), lambda i: (i, 0)),           # x (pipelined)
                pl.BlockSpec((state_s, HIDDEN_PAD), lambda i: (0, 0)),   # w1 (resident)
                pl.BlockSpec((1, HIDDEN_PAD), lambda i: (0, 0)),         # b1
                pl.BlockSpec((HIDDEN_PAD, OUT_PAD), lambda i: (0, 0)),   # fused head W
                pl.BlockSpec((1, OUT_PAD), lambda i: (0, 0)),            # fused head b
            ],
            out_specs=pl.BlockSpec((tb, OUT_PAD), lambda i: (i, 0)),
        ),
        compiler_params=pltpu.CompilerParams(
            dimension_semantics=("parallel",),
        ),
        cost_estimate=pl.CostEstimate(
            flops=flops,
            transcendentals=bp * OUT_PAD,
            bytes_accessed=bytes_accessed,
        ),
    )(x, w1, b1, wh, bh)

    probs = out[:B, :action_s]
    value = out[:B, action_s:action_s + 1]
    return probs, value


def init_params(key, state_s, hidden, action_s):
    """Deterministic init (PyTorch Linear-style uniform bounds), weights as (in, out)."""
    ks = jax.random.split(key, 6)

    def lin(kw, kb, fan_in, fan_out):
        bound = 1.0 / jnp.sqrt(jnp.float32(fan_in))
        w = jax.random.uniform(kw, (fan_in, fan_out), jnp.float32, -bound, bound)
        b = jax.random.uniform(kb, (1, fan_out), jnp.float32, -bound, bound)
        return w, b

    w1, b1 = lin(ks[0], ks[1], state_s, hidden)
    wa, ba = lin(ks[2], ks[3], hidden, action_s)
    wc, bc = lin(ks[4], ks[5], hidden, 1)
    return {"w1": w1, "b1": b1, "wa": wa, "ba": ba, "wc": wc, "bc": bc}


def reference_forward(x, p):
    h = jnp.maximum(x @ p["w1"] + p["b1"], 0.0)
    v = h @ p["wc"] + p["bc"]
    logits = h @ p["wa"] + p["ba"]
    return jax.nn.softmax(logits, axis=-1), v


if __name__ == "__main__":
    key = jax.random.PRNGKey(0)
    k_x, k_p = jax.random.split(key)

    B, STATE_S, HIDDEN, ACTION_S = 8, 16, 32, 4

    x = jax.random.normal(k_x, (B, STATE_S), jnp.float32)
    params = init_params(k_p, STATE_S, HIDDEN, ACTION_S)

    probs, value = ppo_forward(x, params)
    probs, value = jax.block_until_ready(probs), jax.block_until_ready(value)

    # sanity check against plain-JAX reference
    ref_probs, ref_value = reference_forward(x, params)
    assert probs.shape == (B, ACTION_S) and value.shape == (B, 1)
    assert jnp.allclose(probs, ref_probs, atol=1e-5, rtol=1e-5)
    assert jnp.allclose(value, ref_value, atol=1e-5, rtol=1e-5)
    assert jnp.allclose(jnp.sum(probs, axis=-1), 1.0, atol=1e-5)

    # TODO(synk): optimizer / Categorical sampling / PPO loss from the torch module are
    # training-time host logic, not part of the forward pass, and are not translated.

    print("KERNEL_OK")
</pallas_src>

<mosaic_0001>
module attributes {stable_mosaic.version = 11 : i64} {
  func.func @ppo_fused_kernel(%arg0: i32, %arg1: memref<8x16xf32, #tpu.memory_space<vmem>>, %arg2: memref<16x128xf32, #tpu.memory_space<vmem>>, %arg3: memref<1x128xf32, #tpu.memory_space<vmem>>, %arg4: memref<128x128xf32, #tpu.memory_space<vmem>>, %arg5: memref<1x128xf32, #tpu.memory_space<vmem>>, %arg6: memref<8x128xf32, #tpu.memory_space<vmem>>) attributes {dimension_semantics = [#tpu.dimension_semantics<parallel>], iteration_bounds = array<i64: 1>, scalar_prefetch = 0 : i64, scratch_operands = 0 : i64, tpu.core_type = #tpu.core_type<tc>, window_params = [{transform_indices = @transform_0, window_bounds = array<i64: 8, 16>}, {pipeline_mode = #tpu.pipeline_mode<synchronous>, transform_indices = @transform_1, window_bounds = array<i64: 16, 128>}, {pipeline_mode = #tpu.pipeline_mode<synchronous>, transform_indices = @transform_2, window_bounds = array<i64: 1, 128>}, {pipeline_mode = #tpu.pipeline_mode<synchronous>, transform_indices = @transform_3, window_bounds = array<i64: 128, 128>}, {pipeline_mode = #tpu.pipeline_mode<synchronous>, transform_indices = @transform_4, window_bounds = array<i64: 1, 128>}, {transform_indices = @transform_5, window_bounds = array<i64: 8, 128>}]} {
    %c0 = arith.constant 0 : index
    %c0_0 = arith.constant 0 : index
    %0 = vector.load %arg1[%c0, %c0_0] : memref<8x16xf32, #tpu.memory_space<vmem>>, vector<8x16xf32>
    %c0_1 = arith.constant 0 : index
    %c0_2 = arith.constant 0 : index
    %1 = vector.load %arg2[%c0_1, %c0_2] : memref<16x128xf32, #tpu.memory_space<vmem>>, vector<16x128xf32>
    %cst = arith.constant dense<0.000000e+00> : vector<8x128xf32>
    %2 = tpu.matmul %0, %1, %cst {dimension_numbers = #tpu.dot_dimension_numbers<[1], [0], [0], [1], [0, 0, 1, 1], [], []>} : vector<8x16xf32>, vector<16x128xf32>, vector<8x128xf32> -> vector<8x128xf32>
    %c0_3 = arith.constant 0 : index
    %c0_4 = arith.constant 0 : index
    %3 = vector.load %arg3[%c0_3, %c0_4] : memref<1x128xf32, #tpu.memory_space<vmem>>, vector<1x128xf32>
    %4 = vector.broadcast %3 : vector<1x128xf32> to vector<8x128xf32>
    %5 = arith.addf %2, %4 : vector<8x128xf32>
    %cst_5 = arith.constant 0.000000e+00 : f32
    %6 = vector.broadcast %cst_5 : f32 to vector<8x128xf32>
    %7 = arith.maximumf %5, %6 : vector<8x128xf32>
    %c0_6 = arith.constant 0 : index
    %c0_7 = arith.constant 0 : index
    %8 = vector.load %arg4[%c0_6, %c0_7] : memref<128x128xf32, #tpu.memory_space<vmem>>, vector<128x128xf32>
    %cst_8 = arith.constant dense<0.000000e+00> : vector<8x128xf32>
    %9 = tpu.matmul %7, %8, %cst_8 {dimension_numbers = #tpu.dot_dimension_numbers<[1], [0], [0], [1], [0, 0, 1, 1], [], []>} : vector<8x128xf32>, vector<128x128xf32>, vector<8x128xf32> -> vector<8x128xf32>
    %c0_9 = arith.constant 0 : index
    %c0_10 = arith.constant 0 : index
    %10 = vector.load %arg5[%c0_9, %c0_10] : memref<1x128xf32, #tpu.memory_space<vmem>>, vector<1x128xf32>
    %11 = vector.broadcast %10 : vector<1x128xf32> to vector<8x128xf32>
    %12 = arith.addf %9, %11 : vector<8x128xf32>
    %13 = tpu.iota {dimensions = array<i32: 1>} : vector<8x128xi32>
    %c4_i32 = arith.constant 4 : i32
    %14 = vector.broadcast %c4_i32 : i32 to vector<8x128xi32>
    %15 = arith.cmpi slt, %13, %14 : vector<8x128xi32>
    %cst_11 = arith.constant -1.000000e+30 : f32
    %16 = vector.broadcast %cst_11 : f32 to vector<8x128xf32>
    %17 = arith.select %15, %12, %16 : vector<8x128xi1>, vector<8x128xf32>
    %cst_12 = arith.constant dense<0xFF800000> : vector<8xf32>
    %18 = vector.multi_reduction <maximumf>, %17, %cst_12 [1] : vector<8x128xf32> to vector<8xf32>
    %19 = vector.shape_cast %18 : vector<8xf32> to vector<8x1xf32>
    %20 = vector.broadcast %19 : vector<8x1xf32> to vector<8x128xf32>
    %21 = arith.subf %17, %20 : vector<8x128xf32>
    %22 = math.exp %21 : vector<8x128xf32>
    %cst_13 = arith.constant dense<0.000000e+00> : vector<8xf32>
    %23 = vector.multi_reduction <add>, %22, %cst_13 [1] : vector<8x128xf32> to vector<8xf32>
    %24 = vector.shape_cast %23 : vector<8xf32> to vector<8x1xf32>
    %25 = tpu.reciprocal %24 : vector<8x1xf32> -> vector<8x1xf32>
    %26 = vector.broadcast %25 : vector<8x1xf32> to vector<8x128xf32>
    %27 = arith.mulf %22, %26 : vector<8x128xf32>
    %28 = arith.select %15, %27, %12 : vector<8x128xi1>, vector<8x128xf32>
    %c0_14 = arith.constant 0 : index
    %c0_15 = arith.constant 0 : index
    %29 = vector.load %arg6[%c0_14, %c0_15] : memref<8x128xf32, #tpu.memory_space<vmem>>, vector<8x128xf32>
    tpu.vector_store %arg6[%c0_14, %c0_15], %28 {strides = array<i32>} : memref<8x128xf32, #tpu.memory_space<vmem>>, vector<8x128xf32>,
    return
  }
  func.func @transform_0(%arg0: i32) -> (i32, i32) {
    %c0_i32 = arith.constant 0 : i32
    %c0_i32_0 = arith.constant 0 : i32
    return %arg0, %c0_i32 : i32, i32
  }
  func.func @transform_1(%arg0: i32) -> (i32, i32) {
    %c0_i32 = arith.constant 0 : i32
    %c0_i32_0 = arith.constant 0 : i32
    %c0_i32_1 = arith.constant 0 : i32
    return %c0_i32, %c0_i32_0 : i32, i32
  }
  func.func @transform_2(%arg0: i32) -> (i32, i32) {
    %c0_i32 = arith.constant 0 : i32
    %c0_i32_0 = arith.constant 0 : i32
    %c0_i32_1 = arith.constant 0 : i32
    return %c0_i32, %c0_i32_0 : i32, i32
  }
  func.func @transform_3(%arg0: i32) -> (i32, i32) {
    %c0_i32 = arith.constant 0 : i32
    %c0_i32_0 = arith.constant 0 : i32
    %c0_i32_1 = arith.constant 0 : i32
    return %c0_i32, %c0_i32_0 : i32, i32
  }
  func.func @transform_4(%arg0: i32) -> (i32, i32) {
    %c0_i32 = arith.constant 0 : i32
    %c0_i32_0 = arith.constant 0 : i32
    %c0_i32_1 = arith.constant 0 : i32
    return %c0_i32, %c0_i32_0 : i32, i32
  }
  func.func @transform_5(%arg0: i32) -> (i32, i32) {
    %c0_i32 = arith.constant 0 : i32
    %c0_i32_0 = arith.constant 0 : i32
    return %arg0, %c0_i32 : i32, i32
  }
}

</mosaic_0001>

<bundles_post_ra>
// kernel: tpu_custom_call.1
= control target key start
LH: loop header
LB: loop body
LE: loop exit
PB: predicated region body
PF: predicated region fallthrough
CT: control target
= control target key end

     0   :  { %10 = vsyncpa [#allocation3], 0  ;;  %s569_s0 = inlined_call_operand.hbm [shape: f32[8,16], index: 0, kind: input, shape index: {}]   ;;  %s570_s1 = inlined_call_operand.hbm [shape: f32[16,128], index: 1, kind: input, shape index: {}]   ;;  %s571_s2 = inlined_call_operand.vmem [shape: f32[1,128], index: 2, kind: input, shape index: {}]   ;;  %s572_s3 = inlined_call_operand.hbm [shape: f32[128,128], index: 3, kind: input, shape index: {}]   ;;  %s573_s4 = inlined_call_operand.vmem [shape: f32[1,128], index: 4, kind: input, shape index: {}]   ;;  %s574_s5 = inlined_call_operand.hbm [shape: f32[8,128], index: 5, kind: output, shape index: {}]  }
   0x1   :  { %11 = vsyncpa [#allocation6], 0 }
   0x2   :  { %12 = vsyncpa [#allocation4], 0  ;;  %s468_s18 = smov [#allocation5]   ;;  %s374_s22 = scalar_lea.hbm %s570_s1, 256 }
   0x3   :  { %s28_s19 = sshll.u32 %s468_s18, 4  ;;  %p375_p0 = scmp.ne.s32.totalorder %s570_s1, %s374_s22  ;;  %s29_s19 = int_to_ptr.vmem [resolvable:$true] %s28_s19 }
   0x4   :  { %p378_p1 = scmp.lt.u32.totalorder %s374_s22, %s570_s1 }
   0x6   :  { %p380_p2 = pnand %p378_p1, %p375_p0 }
   0x8   :  { %383 = shalt.err (!%p380_p2)
}
   0x9   :  { %s384_s27 = scalar_lea.vmem %s29_s19, 256  ;;  %p389_p4 = scmp.lt.s32.totalorder %s29_s19, %s29_s19 }
   0xa   :  { %p385_p3 = scmp.ne.s32.totalorder %s29_s19, %s384_s27  ;;  %p390_p5 = scmp.lt.s32.totalorder %s384_s27, %s384_s27 }
   0xc   :  { %p391_p6 = por %p390_p5, %p389_p4 }
   0xe   :  { %p392_p7 = pnand %p391_p6, %p385_p3 }
  0x10   :  { %395 = shalt.err (!%p392_p7)
}
  0x11   :  { %s469_s28 = smov 128   ;;  %s470_s29 = smov 8  }
  0x12   :  { %34 = dma.hbm_to_vmem [thread:$0]  %s570_s1, 256, %s29_s19, [#allocation6], %s469_s28, %s469_s28, %s470_s29  }
  0x13   :  { %s471_s7 = smov [#allocation2]   ;;  %s472_s9 = smov [#allocation7]  }
  0x14   :  { %s19_s8 = sshll.u32 %s471_s7, 4  ;;  %s42_s10 = sshll.u32 %s472_s9, 4  ;;  %s20_s8 = int_to_ptr.vmem [resolvable:$true] %s19_s8  ;;  %s43_s10 = int_to_ptr.vmem [resolvable:$true] %s42_s10 }
  0x15   :  { %s396_s13 = scalar_lea.hbm %s569_s0, 128 }
  0x16   :  { %p397_p8 = scmp.ne.s32.totalorder %s569_s0, %s396_s13  ;;  %p400_p9 = scmp.lt.u32.totalorder %s396_s13, %s569_s0 }
  0x18   :  { %p402_p10 = pnand %p400_p9, %p397_p8 }
  0x1a   :  { %405 = shalt.err (!%p402_p10)
}
  0x1b   :  { %s406_s1 = scalar_lea.vmem %s20_s8, 128  ;;  %p411_p12 = scmp.lt.s32.totalorder %s20_s8, %s20_s8 }
  0x1c   :  { %p407_p11 = scmp.ne.s32.totalorder %s20_s8, %s406_s1  ;;  %p412_p13 = scmp.lt.s32.totalorder %s406_s1, %s406_s1 }
  0x1e   :  { %p413_p0 = por %p412_p13, %p411_p12 }
  0x20   :  { %p414_p1 = pnand %p413_p0, %p407_p11 }
  0x22   :  { %417 = shalt.err (!%p414_p1)
}
  0x23   :  { %22 = dma.hbm_to_vmem [thread:$0]  %s569_s0, 128, %s20_s8, [#allocation3]  }
  0x24   :  { %s418_s22 = scalar_lea.hbm %s572_s3, 2048 }
  0x25   :  { %p419_p2 = scmp.ne.s32.totalorder %s572_s3, %s418_s22  ;;  %p422_p3 = scmp.lt.u32.totalorder %s418_s22, %s572_s3 }
  0x27   :  { %p424_p4 = pnand %p422_p3, %p419_p2 }
  0x29   :  { %427 = shalt.err (!%p424_p4)
}
  0x2a   :  { %s428_s27 = scalar_lea.vmem %s43_s10, 2048  ;;  %p433_p6 = scmp.lt.s32.totalorder %s43_s10, %s43_s10 }
  0x2b   :  { %p429_p5 = scmp.ne.s32.totalorder %s43_s10, %s428_s27  ;;  %p434_p7 = scmp.lt.s32.totalorder %s428_s27, %s428_s27 }
  0x2d   :  { %p435_p8 = por %p434_p7, %p433_p6 }
  0x2f   :  { %p436_p9 = pnand %p435_p8, %p429_p5 }
  0x31   :  { %439 = shalt.err (!%p436_p9)
}
  0x32   :  { %48 = dma.hbm_to_vmem [thread:$0]  %s572_s3, 2048, %s43_s10, [#allocation6], %s469_s28, %s469_s28, %s470_s29  }
  0x33   :  { %462 = dma.done.wait [#allocation3], 128  }
  0x34   :  { %463 = vsyncadd [#allocation3], 4294967168 }
  0x35   :  { %464 = dma.done.wait [#allocation6], 2304  }
  0x36   :  { %465 = vsyncadd [#allocation6], 4294964992  ;;  %v473_v0 = vmov 0.0|0.0   ;;  %vm474_vm0 = vmmov 0   ;;  %v475_v1 = vmov 0.0   ;;  %v61_v2 = vld [vmem:[#allocation5] sm:$0xff]  ;;  %v238_v35 = vlaneseq }
  0x37   :  { %334 = vmatprep.subr.bf16.mxu0 %v473_v0  ;;  %296 = vmatprep.mubr.msk.f32.mxu0 %vm474_vm0, %v475_v1  ;;  %v62_v3 = vld [vmem:[#allocation5 + $0x8] sm:$0xff]  ;;  %v145_v5 = vld [vmem:[#allocation7] sm:$0xff]  ;;  %v146_v6 = vld [vmem:[#allocation7 + $0x8] sm:$0xff]  ;;  %vm70_vm1 = vcmask 130048  }
  0x38   :  { %337 = vmatprep.subr.bf16.mxu1 %v473_v0  ;;  %331 = vmatprep.mubr.msk.f32.mxu1 %vm474_vm0, %v475_v1  ;;  %v335_v4 = vpack.c.bf16 %v62_v3, %v61_v2  ;;  %v147_v7 = vld [vmem:[#allocation7 + $0x10] sm:$0xff]  ;;  %v338_v8 = vpack.c.bf16 %v146_v6, %v145_v5  ;;  %v148_v9 = vld [vmem:[#allocation7 + $0x18] sm:$0xff]  ;;  %v60_v10 = vld [vmem:[#allocation2] sm:$0xff]  ;;  %v239_v36 = vand.u32 127, %v238_v35 }
  0x39   :  { %v341_v11 = vpack.c.bf16 %v148_v9, %v147_v7  ;;  %v149_v12 = vld [vmem:[#allocation7 + $0x20] sm:$0xff]  ;;  %v150_v13 = vld [vmem:[#allocation7 + $0x28] sm:$0xff]  ;;  %v151_v15 = vld [vmem:[#allocation7 + $0x30] sm:$0xff] }
  0x3a   :  { %336 = vmatpush3.bf16.msra.mxu0 %v335_v4  ;;  %339 = vmatpush3.bf16.msra.mxu1 %v338_v8  ;;  %v344_v14 = vpack.c.bf16 %v150_v13, %v149_v12  ;;  %v152_v16 = vld [vmem:[#allocation7 + $0x38] sm:$0xff]  ;;  %v153_v18 = vld [vmem:[#allocation7 + $0x40] sm:$0xff]  ;;  %v154_v19 = vld [vmem:[#allocation7 + $0x48] sm:$0xff]  ;;  %vm240_vm2 = vcmp.lt.s32.totalorder %v239_v36, 4 }
  0x3b   :  { %340 = vmatprep.subr.bf16.mxu1 %v473_v0  ;;  %v347_v17 = vpack.c.bf16 %v152_v16, %v151_v15  ;;  %v350_v20 = vpack.c.bf16 %v154_v19, %v153_v18  ;;  %v155_v21 = vld [vmem:[#allocation7 + $0x50] sm:$0xff]  ;;  %v156_v22 = vld [vmem:[#allocation7 + $0x58] sm:$0xff]  ;;  %v157_v24 = vld [vmem:[#allocation7 + $0x60] sm:$0xff] }
  0x3c   :  { %v353_v23 = vpack.c.bf16 %v156_v22, %v155_v21  ;;  %v158_v25 = vld [vmem:[#allocation7 + $0x68] sm:$0xff]  ;;  %v159_v27 = vld [vmem:[#allocation7 + $0x70] sm:$0xff]  ;;  %v160_v28 = vld [vmem:[#allocation7 + $0x78] sm:$0xff] }
  0x3d   :  { %297 = vmatmul.mubr.msk.f32.vlgmr.msra.gmra.mrb[0].mxu0 %vm70_vm1, %v60_v10  ;;  %v356_v26 = vpack.c.bf16 %v158_v25, %v157_v24  ;;  %v359_v29 = vpack.c.bf16 %v160_v28, %v159_v27  ;;  %v269_v30 = vld [vmem:[%s571_s2] ss:$0 sm:$0xff]  ;;  %s476_s2 = smov [#allocation8]  }
  0x3e   :  { %342 = vmatpush3.bf16.msra.mxu1 %v341_v11  ;;  %v271_v37 = vld [vmem:[%s573_s4] ss:$0 sm:$0xff]  ;;  %s259_s7 = sshll.u32 %s476_s2, 4  ;;  %s260_s7 = int_to_ptr.vmem [resolvable:$true] %s259_s7 }
  0x3f   :  { %343 = vmatprep.subr.bf16.mxu1 %v473_v0  ;;  %s440_s4 = scalar_lea.vmem %s260_s7, 128  ;;  %p445_p11 = scmp.lt.s32.totalorder %s260_s7, %s260_s7 }
  0x40   :  { %p441_p10 = scmp.ne.s32.totalorder %s260_s7, %s440_s4  ;;  %p446_p12 = scmp.lt.s32.totalorder %s440_s4, %s440_s4 }
  0x42   :  { %345 = vmatpush3.bf16.msra.mxu1 %v344_v14  ;;  %p447_p13 = por %p446_p12, %p445_p11 }
  0x43   :  { %346 = vmatprep.subr.bf16.mxu1 %v473_v0 }
  0x44   :  { %p448_p0 = pnand %p447_p13, %p441_p10 }
  0x46   :  { %348 = vmatpush3.bf16.msra.mxu1 %v347_v17 }
  0x47   :  { %349 = vmatprep.subr.bf16.mxu1 %v473_v0 }
  0x4a   :  { %351 = vmatpush3.bf16.msra.mxu1 %v350_v20 }
  0x4b   :  { %352 = vmatprep.subr.bf16.mxu1 %v473_v0 }
  0x4e   :  { %354 = vmatpush3.bf16.msra.mxu1 %v353_v23 }
  0x4f   :  { %355 = vmatprep.subr.bf16.mxu1 %v473_v0 }
  0x52   :  { %357 = vmatpush3.bf16.msra.mxu1 %v356_v26 }
  0x53   :  { %358 = vmatprep.subr.bf16.mxu1 %v473_v0 }
  0x56   :  { %360 = vmatpush3.bf16.msra.mxu1 %v359_v29 }
 0x110   :  { %v140_v31 = vpop.f32.mrb[0].mxu0 }
 0x111   :  { %v141_v32 = vadd.f32 %v269_v30, %v140_v31  ;;  %v298_v33 = vpop.f32.mrb[1].mxu0 }
 0x113   :  { %v144_v34 = vmax.f32 %v141_v32, 0.0 }
 0x115   :  { %332 = vmatmul.mubr.f32.vlgmr.msra.gmra.mrb[0].mxu1 %v144_v34 }
 0x1e8   :  { %v234_v38 = vpop.f32.mrb[0].mxu1 }
 0x1e9   :  { %v235_v39 = vadd.f32 %v271_v37, %v234_v38  ;;  %v333_v40 = vpop.f32.mrb[1].mxu1 }
 0x1eb   :  { %v241_v41 = vsel %vm240_vm2, %v235_v39, -1e+30 }
 0x1ec   :  { %242 = vmax.xlane.f32.xlu0 %v241_v41 }
 0x279   :  { %v243_v42 = vpop.xlane.xlu0 %242 }
 0x27a   :  { %v244_v43 = vsub.f32 %v241_v41, %v243_v42 }
 0x27c   :  { %v245_v44 = vmul.f32 1.442695, %v244_v43 }
 0x27e   :  { %370 = vpow2.f32 %v245_v44 }
 0x288   :  { %v371_v45 = vpop.eup %370 }
 0x289   :  { %247 = vadd.xlane.f32.xlu0 %v371_v45 }
 0x316   :  { %v248_v46 = vpop.xlane.xlu0 %247 }
 0x317   :  { %372 = vrcp.f32 %v248_v46 }
 0x321   :  { %v373_v47 = vpop.eup %372 }
 0x322   :  { %v250_v48 = vmul.f32 %v373_v47, %v371_v45 }
 0x324   :  { %v251_v49 = vsel %vm240_vm2, %v250_v48, %v235_v39 }
 0x325   :  { %252 = vst [vmem:[#allocation8] sm:$0xff] %v251_v49 }
 0x326   :  { %451 = shalt.err (!%p448_p0)
}
 0x327   :  { %s452_s10 = scalar_lea.hbm %s574_s5, 128 }
 0x328   :  { %p453_p1 = scmp.ne.s32.totalorder %s574_s5, %s452_s10  ;;  %p456_p2 = scmp.lt.u32.totalorder %s452_s10, %s574_s5 }
 0x32a   :  { %p458_p3 = pnand %p456_p2, %p453_p1 }
 0x32c   :  { %461 = shalt.err (!%p458_p3)
}
 0x32d   :  { %262 = dma.vmem_to_hbm [thread:$0]  %s260_s7, 128, %s574_s5, [#allocation4]  }
 0x32e   :  { %466 = dma.done.wait [#allocation4], 128  }
 0x32f   :  { %467 = vsyncadd [#allocation4], 4294967168 }
 0x330   :  { %266 = vsyncpa [#allocation3], 1 }
 0x331   :  { %267 = vsyncpa [#allocation6], 1 }
 0x332   :  { %268 = vsyncpa [#allocation4], 1 }

</bundles_post_ra>
